<compile_context>
chip_gen: v7x
topology: tpu7x:2x2x1
jax: 0.10.0
libtpu: 0.0.40
codegen_flags: <defaults>
</compile_context>

<pallas_src>
import functools

import jax
import jax.numpy as jnp
from jax.experimental import pallas as pl
from jax.experimental.pallas import tpu as pltpu


def _inblock_kernel(x_ref, w_ref, params_ref, mask_ref, o_ref, *, K, H, W, pad):
    # x_ref:      (Nb, Cin, H*W)   NCHW-flat samples (no halo pad)
    # w_ref:      (Cout, K*K*Cin)  conv weights, row order (dy, dx, cin)
    # params_ref: (Cout, 3)        columns: [bias | gamma | beta]
    # mask_ref:   (K*K, H*W)       per-tap combined H/W boundary validity (0/1)
    # o_ref:      (Nb, Cout, H*W)  lane-dense output (NCHW-flat)
    Nb, Cin, HW = x_ref.shape
    Cout = o_ref.shape[1]
    inv_cnt = 1.0 / float(Cout * HW)

    # Hoisted once per grid step.
    w = w_ref[...]                       # (Cout, K*K*Cin)
    bias = params_ref[:, 0:1]            # (Cout, 1)
    gamma = params_ref[:, 1:2]
    beta = params_ref[:, 2:3]
    masks = mask_ref[...]                # (K*K, H*W)

    def process_sample(n):
        x_n = x_ref[n]                   # (Cin, H*W) loaded once

        # --- im2col in registers: each tap is a static lane-roll of the
        #     flattened sample; positions whose source falls outside the
        #     image are zeroed by the mask (so the roll wrap never leaks). ---
        slabs = []
        for dy in range(K):
            for dx in range(K):
                off = (dy - pad) * W + (dx - pad)         # static tap offset
                if off == 0:
                    slabs.append(x_n)                     # center tap
                else:
                    t = dy * K + dx
                    rolled = pltpu.roll(x_n, shift=(-off) % HW, axis=1)
                    slabs.append(rolled * masks[t:t + 1, :])
        rhs = jnp.concatenate(slabs, axis=0)              # (K*K*Cin, H*W)

        # --- single fused MXU matmul: (Cout, KKCin) @ (KKCin, H*W) ---
        acc = jnp.dot(w, rhs, preferred_element_type=jnp.float32)
        acc = acc + bias                                  # (Cout, H*W)

        # --- GroupNorm(num_groups=1): lane-reduce first, tiny sublane finish ---
        row_s = jnp.sum(acc, axis=1, keepdims=True)       # (Cout, 1)
        row_ss = jnp.sum(acc * acc, axis=1, keepdims=True)
        mean = jnp.sum(row_s) * inv_cnt
        var = jnp.maximum(jnp.sum(row_ss) * inv_cnt - mean * mean, 0.0)
        inv = jax.lax.rsqrt(var + 1e-5)
        scale = inv * gamma                               # (Cout, 1)
        shift = beta - mean * scale                       # (Cout, 1)
        y = acc * scale + shift

        # --- LeakyReLU(0.2) ---
        y = jnp.where(y >= 0.0, y, 0.2 * y)
        o_ref[n] = y.astype(o_ref.dtype)                  # lane-dense store

    if Nb <= 4:
        # Small per-step batch: static unroll is fine (no code-size blowup).
        for n in range(Nb):
            process_sample(n)
    else:
        # Large per-step batch: keep a visible loop so code size / vreg
        # pressure stay flat and the LLO scheduler can pipeline it.
        def body(n, carry):
            process_sample(n)
            return carry
        jax.lax.fori_loop(0, Nb, body, 0, unroll=2)


def _choose_samples_per_step(N, Cin, Cout, HW):
    """Samples per grid step: amortize the ~0.35us per-step pipeline overhead
    (target ~0.5 MB of activations per step) while keeping >=2 grid steps so a
    'parallel' grid feeds both v7x TensorCores; v5e/v6e just see fewer steps."""
    bytes_per_sample = 4 * HW * (Cin + Cout)
    nb = max(1, (512 * 1024) // bytes_per_sample)
    nb = min(nb, 64, N)
    if N >= 2:
        nb = min(nb, max(1, N // 2))      # keep at least 2 grid steps
    while N % nb:
        nb -= 1
    return nb


@functools.partial(jax.jit, static_argnames=("samples_per_step",))
def inblock_forward(x_nchw, w_hwio, bias, gamma, beta, samples_per_step=None):
    """InBlock forward: (N, Cin, H, W) f32 -> (N, Cout, H, W) f32 (NCHW)."""
    N, Cin, H, W = x_nchw.shape
    K = w_hwio.shape[0]
    Cout = w_hwio.shape[3]
    pad = (K - 1) // 2
    HW = H * W
    Nb = samples_per_step or _choose_samples_per_step(N, Cin, Cout, HW)
    assert N % Nb == 0, "batch must be divisible by samples_per_step"

    # Free contiguous reshape: no transpose, no halo pad, single HBM read.
    x_flat = x_nchw.reshape(N, Cin, HW)

    # (K, K, Cin, Cout) -> (Cout, K*K*Cin); row order (dy, dx, cin) matches the
    # in-kernel tap/concat order.
    w2 = jnp.transpose(w_hwio.reshape(K * K * Cin, Cout), (1, 0))
    params = jnp.stack([bias, gamma, beta], axis=1)            # (Cout, 3)

    # Per-tap combined H/W boundary validity mask (1 = in-image, 0 = padding).
    rows = jnp.arange(H, dtype=jnp.int32)
    cols = jnp.arange(W, dtype=jnp.int32)
    mask_list = []
    for dy in range(K):
        for dx in range(K):
            vr = (rows + dy - pad >= 0) & (rows + dy - pad < H)
            vc = (cols + dx - pad >= 0) & (cols + dx - pad < W)
            m = (vr[:, None] & vc[None, :]).astype(jnp.float32).reshape(HW)
            mask_list.append(m)
    masks = jnp.stack(mask_list, axis=0)                       # (K*K, H*W)

    kernel = functools.partial(_inblock_kernel, K=K, H=H, W=W, pad=pad)
    out = pl.pallas_call(
        kernel,
        out_shape=jax.ShapeDtypeStruct((N, Cout, HW), jnp.float32),
        grid_spec=pltpu.PrefetchScalarGridSpec(
            num_scalar_prefetch=0,
            grid=(N // Nb,),
            in_specs=[
                pl.BlockSpec((Nb, Cin, HW), lambda b: (b, 0, 0)),
                pl.BlockSpec((Cout, K * K * Cin), lambda b: (0, 0)),
                pl.BlockSpec((Cout, 3), lambda b: (0, 0)),
                pl.BlockSpec((K * K, HW), lambda b: (0, 0)),
            ],
            out_specs=pl.BlockSpec((Nb, Cout, HW), lambda b: (b, 0, 0)),
        ),
        compiler_params=pltpu.CompilerParams(
            dimension_semantics=("parallel",)),
    )(x_flat, w2, params, masks)

    # (N, Cout, H*W) -> (N, Cout, H, W): contiguous reshape, no transpose.
    return out.reshape(N, Cout, H, W)


def reference_forward(x_nchw, w_hwio, bias, gamma, beta):
    """Pure-JAX reference mirroring Conv2d + GroupNorm(1) + LeakyReLU(0.2)."""
    x_nhwc = jnp.transpose(x_nchw, (0, 2, 3, 1)).astype(jnp.float32)
    y = jax.lax.conv_general_dilated(
        x_nhwc, w_hwio.astype(jnp.float32),
        window_strides=(1, 1), padding="SAME",
        dimension_numbers=("NHWC", "HWIO", "NHWC"))
    y = y + bias[None, None, None, :]
    mean = jnp.mean(y, axis=(1, 2, 3), keepdims=True)
    var = jnp.mean((y - mean) ** 2, axis=(1, 2, 3), keepdims=True)
    y = (y - mean) * jax.lax.rsqrt(var + 1e-5)
    y = y * gamma[None, None, None, :] + beta[None, None, None, :]
    y = jnp.where(y >= 0, y, 0.2 * y)
    return jnp.transpose(y, (0, 3, 1, 2))


if __name__ == "__main__":
    # Small shapes consistent with the module: batch=2, in_ch=4, out_ch=8, 16x16.
    N, Cin, Cout, H, W, K = 2, 4, 8, 16, 16, 3

    key = jax.random.PRNGKey(0)
    k_x, k_w, k_b, k_g, k_be = jax.random.split(key, 5)

    x = jax.random.normal(k_x, (N, Cin, H, W), dtype=jnp.float32)
    # Conv weights stored HWIO for the kernel; roughly kaiming-like scale.
    w_hwio = jax.random.normal(k_w, (K, K, Cin, Cout), dtype=jnp.float32) * 0.1
    bias = jax.random.normal(k_b, (Cout,), dtype=jnp.float32) * 0.05
    # GroupNorm affine params (mildly non-trivial to exercise the epilogue).
    gamma = 1.0 + 0.1 * jax.random.normal(k_g, (Cout,), dtype=jnp.float32)
    beta = 0.1 * jax.random.normal(k_be, (Cout,), dtype=jnp.float32)

    # Auto samples_per_step -> Nb=1, grid=(2,) parallel: both v7x TCs get work.
    out = inblock_forward(x, w_hwio, bias, gamma, beta)
    out = jax.block_until_ready(out)

    ref = reference_forward(x, w_hwio, bias, gamma, beta)
    assert out.shape == (N, Cout, H, W)
    assert jnp.allclose(out, ref, atol=1e-4, rtol=1e-4), "mismatch vs reference"

    print("KERNEL_OK")
</pallas_src>

<mosaic_0001>
module attributes {stable_mosaic.version = 11 : i64} {
  func.func @_inblock_kernel(%arg0: i32, %arg1: memref<1x4x256xf32, #tpu.memory_space<vmem>>, %arg2: memref<8x36xf32, #tpu.memory_space<vmem>>, %arg3: memref<8x3xf32, #tpu.memory_space<vmem>>, %arg4: memref<9x256xf32, #tpu.memory_space<vmem>>, %arg5: memref<1x8x256xf32, #tpu.memory_space<vmem>>) attributes {dimension_semantics = [#tpu.dimension_semantics<parallel>], iteration_bounds = array<i64: 2>, scalar_prefetch = 0 : i64, scratch_operands = 0 : i64, tpu.core_type = #tpu.core_type<tc>, window_params = [{transform_indices = @transform_0, window_bounds = array<i64: 1, 4, 256>}, {pipeline_mode = #tpu.pipeline_mode<synchronous>, transform_indices = @transform_1, window_bounds = array<i64: 8, 36>}, {pipeline_mode = #tpu.pipeline_mode<synchronous>, transform_indices = @transform_2, window_bounds = array<i64: 8, 3>}, {pipeline_mode = #tpu.pipeline_mode<synchronous>, transform_indices = @transform_3, window_bounds = array<i64: 9, 256>}, {transform_indices = @transform_4, window_bounds = array<i64: 1, 8, 256>}]} {
    %c0 = arith.constant 0 : index
    %c0_0 = arith.constant 0 : index
    %0 = vector.load %arg2[%c0, %c0_0] : memref<8x36xf32, #tpu.memory_space<vmem>>, vector<8x36xf32>
    %c0_1 = arith.constant 0 : index
    %c0_2 = arith.constant 0 : index
    %1 = vector.load %arg3[%c0_1, %c0_2] : memref<8x3xf32, #tpu.memory_space<vmem>>, vector<8x1xf32>
    %c0_3 = arith.constant 0 : index
    %c1 = arith.constant 1 : index
    %2 = vector.load %arg3[%c0_3, %c1] : memref<8x3xf32, #tpu.memory_space<vmem>>, vector<8x1xf32>
    %c0_4 = arith.constant 0 : index
    %c2 = arith.constant 2 : index
    %3 = vector.load %arg3[%c0_4, %c2] : memref<8x3xf32, #tpu.memory_space<vmem>>, vector<8x1xf32>
    %c0_5 = arith.constant 0 : index
    %c0_6 = arith.constant 0 : index
    %4 = vector.load %arg4[%c0_5, %c0_6] : memref<9x256xf32, #tpu.memory_space<vmem>>, vector<9x256xf32>
    %c0_7 = arith.constant 0 : index
    %c0_8 = arith.constant 0 : index
    %c0_9 = arith.constant 0 : index
    %5 = vector.load %arg1[%c0_7, %c0_8, %c0_9] : memref<1x4x256xf32, #tpu.memory_space<vmem>>, vector<1x4x256xf32>
    %6 = vector.shape_cast %5 : vector<1x4x256xf32> to vector<4x256xf32>
    %c17_i32 = arith.constant 17 : i32
    %7 = tpu.dynamic_rotate %6 by %c17_i32 dim 1 : vector<4x256xf32>, i32 -> vector<4x256xf32>
    %8 = vector.extract_strided_slice %4 {offsets = [0, 0], sizes = [1, 256], strides = [1, 1]} : vector<9x256xf32> to vector<1x256xf32>
    %9 = vector.broadcast %8 : vector<1x256xf32> to vector<4x256xf32>
    %10 = arith.mulf %7, %9 : vector<4x256xf32>
    %c16_i32 = arith.constant 16 : i32
    %11 = tpu.dynamic_rotate %6 by %c16_i32 dim 1 : vector<4x256xf32>, i32 -> vector<4x256xf32>
    %12 = vector.extract_strided_slice %4 {offsets = [1, 0], sizes = [1, 256], strides = [1, 1]} : vector<9x256xf32> to vector<1x256xf32>
    %13 = vector.broadcast %12 : vector<1x256xf32> to vector<4x256xf32>
    %14 = arith.mulf %11, %13 : vector<4x256xf32>
    %c15_i32 = arith.constant 15 : i32
    %15 = tpu.dynamic_rotate %6 by %c15_i32 dim 1 : vector<4x256xf32>, i32 -> vector<4x256xf32>
    %16 = vector.extract_strided_slice %4 {offsets = [2, 0], sizes = [1, 256], strides = [1, 1]} : vector<9x256xf32> to vector<1x256xf32>
    %17 = vector.broadcast %16 : vector<1x256xf32> to vector<4x256xf32>
    %18 = arith.mulf %15, %17 : vector<4x256xf32>
    %c1_i32 = arith.constant 1 : i32
    %19 = tpu.dynamic_rotate %6 by %c1_i32 dim 1 : vector<4x256xf32>, i32 -> vector<4x256xf32>
    %20 = vector.extract_strided_slice %4 {offsets = [3, 0], sizes = [1, 256], strides = [1, 1]} : vector<9x256xf32> to vector<1x256xf32>
    %21 = vector.broadcast %20 : vector<1x256xf32> to vector<4x256xf32>
    %22 = arith.mulf %19, %21 : vector<4x256xf32>
    %c255_i32 = arith.constant 255 : i32
    %23 = tpu.dynamic_rotate %6 by %c255_i32 dim 1 : vector<4x256xf32>, i32 -> vector<4x256xf32>
    %24 = vector.extract_strided_slice %4 {offsets = [5, 0], sizes = [1, 256], strides = [1, 1]} : vector<9x256xf32> to vector<1x256xf32>
    %25 = vector.broadcast %24 : vector<1x256xf32> to vector<4x256xf32>
    %26 = arith.mulf %23, %25 : vector<4x256xf32>
    %c241_i32 = arith.constant 241 : i32
    %27 = tpu.dynamic_rotate %6 by %c241_i32 dim 1 : vector<4x256xf32>, i32 -> vector<4x256xf32>
    %28 = vector.extract_strided_slice %4 {offsets = [6, 0], sizes = [1, 256], strides = [1, 1]} : vector<9x256xf32> to vector<1x256xf32>
    %29 = vector.broadcast %28 : vector<1x256xf32> to vector<4x256xf32>
    %30 = arith.mulf %27, %29 : vector<4x256xf32>
    %c240_i32 = arith.constant 240 : i32
    %31 = tpu.dynamic_rotate %6 by %c240_i32 dim 1 : vector<4x256xf32>, i32 -> vector<4x256xf32>
    %32 = vector.extract_strided_slice %4 {offsets = [7, 0], sizes = [1, 256], strides = [1, 1]} : vector<9x256xf32> to vector<1x256xf32>
    %33 = vector.broadcast %32 : vector<1x256xf32> to vector<4x256xf32>
    %34 = arith.mulf %31, %33 : vector<4x256xf32>
    %c239_i32 = arith.constant 239 : i32
    %35 = tpu.dynamic_rotate %6 by %c239_i32 dim 1 : vector<4x256xf32>, i32 -> vector<4x256xf32>
    %36 = vector.extract_strided_slice %4 {offsets = [8, 0], sizes = [1, 256], strides = [1, 1]} : vector<9x256xf32> to vector<1x256xf32>
    %37 = vector.broadcast %36 : vector<1x256xf32> to vector<4x256xf32>
    %38 = arith.mulf %35, %37 : vector<4x256xf32>
    %39 = tpu.concatenate %10, %14, %18, %22, %6, %26, %30, %34, %38 in 0 : vector<4x256xf32>, vector<4x256xf32>, vector<4x256xf32>, vector<4x256xf32>, vector<4x256xf32>, vector<4x256xf32>, vector<4x256xf32>, vector<4x256xf32>, vector<4x256xf32> -> vector<36x256xf32>
    %cst = arith.constant dense<0.000000e+00> : vector<8x256xf32>
    %40 = tpu.matmul %0, %39, %cst {dimension_numbers = #tpu.dot_dimension_numbers<[1], [0], [0], [1], [0, 0, 1, 1], [], []>} : vector<8x36xf32>, vector<36x256xf32>, vector<8x256xf32> -> vector<8x256xf32>
    %41 = vector.broadcast %1 : vector<8x1xf32> to vector<8x256xf32>
    %42 = arith.addf %40, %41 : vector<8x256xf32>
    %cst_10 = arith.constant dense<0.000000e+00> : vector<8xf32>
    %43 = vector.multi_reduction <add>, %42, %cst_10 [1] : vector<8x256xf32> to vector<8xf32>
    %44 = vector.shape_cast %43 : vector<8xf32> to vector<8x1xf32>
    %45 = arith.mulf %42, %42 : vector<8x256xf32>
    %cst_11 = arith.constant dense<0.000000e+00> : vector<8xf32>
    %46 = vector.multi_reduction <add>, %45, %cst_11 [1] : vector<8x256xf32> to vector<8xf32>
    %47 = vector.shape_cast %46 : vector<8xf32> to vector<8x1xf32>
    %48 = vector.shape_cast %44 : vector<8x1xf32> to vector<1x8x1xf32>
    %cst_12 = arith.constant dense<0.000000e+00> : vector<1xf32>
    %49 = vector.multi_reduction <add>, %48, %cst_12 [1, 2] : vector<1x8x1xf32> to vector<1xf32>
    %50 = vector.shape_cast %49 : vector<1xf32> to vector<1x1x1xf32>
    %51 = vector.extract %50[0, 0, 0] : f32 from vector<1x1x1xf32>
    %cst_13 = arith.constant 4.8828125E-4 : f32
    %52 = arith.mulf %51, %cst_13 : f32
    %53 = vector.shape_cast %47 : vector<8x1xf32> to vector<1x8x1xf32>
    %cst_14 = arith.constant dense<0.000000e+00> : vector<1xf32>
    %54 = vector.multi_reduction <add>, %53, %cst_14 [1, 2] : vector<1x8x1xf32> to vector<1xf32>
    %55 = vector.shape_cast %54 : vector<1xf32> to vector<1x1x1xf32>
    %56 = vector.extract %55[0, 0, 0] : f32 from vector<1x1x1xf32>
    %cst_15 = arith.constant 4.8828125E-4 : f32
    %57 = arith.mulf %56, %cst_15 : f32
    %58 = arith.mulf %52, %52 : f32
    %59 = arith.subf %57, %58 : f32
    %cst_16 = arith.constant 0.000000e+00 : f32
    %60 = arith.maximumf %59, %cst_16 : f32
    %cst_17 = arith.constant 9.99999974E-6 : f32
    %61 = arith.addf %60, %cst_17 : f32
    %62 = math.rsqrt %61 : f32
    %63 = vector.broadcast %62 : f32 to vector<8x1xf32>
    %64 = arith.mulf %63, %2 : vector<8x1xf32>
    %65 = vector.broadcast %52 : f32 to vector<8x1xf32>
    %66 = arith.mulf %65, %64 : vector<8x1xf32>
    %67 = arith.subf %3, %66 : vector<8x1xf32>
    %68 = vector.broadcast %64 : vector<8x1xf32> to vector<8x256xf32>
    %69 = arith.mulf %42, %68 : vector<8x256xf32>
    %70 = vector.broadcast %67 : vector<8x1xf32> to vector<8x256xf32>
    %71 = arith.addf %69, %70 : vector<8x256xf32>
    %cst_18 = arith.constant 0.000000e+00 : f32
    %72 = vector.broadcast %cst_18 : f32 to vector<8x256xf32>
    %73 = arith.cmpf oge, %71, %72 : vector<8x256xf32>
    %cst_19 = arith.constant 2.000000e-01 : f32
    %74 = vector.broadcast %cst_19 : f32 to vector<8x256xf32>
    %75 = arith.mulf %74, %71 : vector<8x256xf32>
    %76 = arith.select %73, %71, %75 : vector<8x256xi1>, vector<8x256xf32>
    %c0_20 = arith.constant 0 : index
    %c0_21 = arith.constant 0 : index
    %c0_22 = arith.constant 0 : index
    %77 = vector.load %arg5[%c0_20, %c0_21, %c0_22] : memref<1x8x256xf32, #tpu.memory_space<vmem>>, vector<1x8x256xf32>
    %78 = vector.shape_cast %77 : vector<1x8x256xf32> to vector<8x256xf32>
    %79 = vector.shape_cast %76 : vector<8x256xf32> to vector<1x8x256xf32>
    tpu.vector_store %arg5[%c0_20, %c0_21, %c0_22], %79 {strides = array<i32>} : memref<1x8x256xf32, #tpu.memory_space<vmem>>, vector<1x8x256xf32>,
    return
  }
  func.func @transform_0(%arg0: i32) -> (i32, i32, i32) {
    %c0_i32 = arith.constant 0 : i32
    %c0_i32_0 = arith.constant 0 : i32
    %c0_i32_1 = arith.constant 0 : i32
    return %arg0, %c0_i32, %c0_i32_0 : i32, i32, i32
  }
  func.func @transform_1(%arg0: i32) -> (i32, i32) {
    %c0_i32 = arith.constant 0 : i32
    %c0_i32_0 = arith.constant 0 : i32
    %c0_i32_1 = arith.constant 0 : i32
    return %c0_i32, %c0_i32_0 : i32, i32
  }
  func.func @transform_2(%arg0: i32) -> (i32, i32) {
    %c0_i32 = arith.constant 0 : i32
    %c0_i32_0 = arith.constant 0 : i32
    %c0_i32_1 = arith.constant 0 : i32
    return %c0_i32, %c0_i32_0 : i32, i32
  }
  func.func @transform_3(%arg0: i32) -> (i32, i32) {
    %c0_i32 = arith.constant 0 : i32
    %c0_i32_0 = arith.constant 0 : i32
    %c0_i32_1 = arith.constant 0 : i32
    return %c0_i32, %c0_i32_0 : i32, i32
  }
  func.func @transform_4(%arg0: i32) -> (i32, i32, i32) {
    %c0_i32 = arith.constant 0 : i32
    %c0_i32_0 = arith.constant 0 : i32
    %c0_i32_1 = arith.constant 0 : i32
    return %arg0, %c0_i32, %c0_i32_0 : i32, i32, i32
  }
}

</mosaic_0001>

<bundles_post_ra>
// kernel: inblock_forward.1
= control target key start
LH: loop header
LB: loop body
LE: loop exit
PB: predicated region body
PF: predicated region fallthrough
CT: control target
= control target key end

     0   :  { %s695_s15 = smov 0   ;;  %s821_s0 = inlined_call_operand.vmem [shape: f32[2,4,256], index: 0, kind: input, shape index: {}]   ;;  %s822_s1 = inlined_call_operand.vmem [shape: f32[8,36], index: 1, kind: input, shape index: {}]   ;;  %s823_s2 = inlined_call_operand.vmem [shape: f32[8,3], index: 2, kind: input, shape index: {}]   ;;  %s824_s3 = inlined_call_operand.vmem [shape: f32[9,256], index: 3, kind: input, shape index: {}]   ;;  %s825_s4 = inlined_call_operand.vmem [shape: f32[2,8,256], index: 4, kind: output, shape index: {}]  }
   0x1 LB: > { %s589_s16 = sadd.s32 4294967295, %s655_s15   ;;  %p593_p0 = scmp.ge.s32.totalorder %s655_s15, 1  ;;  %s655_s15 = sphi %s695_s15, %s14_s15  }
   0x2   : > { %p162_p1 = scmp.lt.s32.totalorder %s655_s15, 3 }
   0x4   : > { %p163_p2 = pnand %p593_p0, %p162_p1 }
   0x5   : > { %p188_p3 = scmp.lt.s32.totalorder (!%p163_p2), %s589_s16, 1  ;;  %s657_s21 = smov (!%p163_p2), 1   ;;  %v663_v2 = vmov (!%p163_p2), 0.0   ;;  %v665_v3 = vmov (!%p163_p2), 0   ;;  %v736_v4 = vld [vmem:[%s823_s2] sm:$0xff] (!%p163_p2)  ;;  %v212_v5 = vlaneseq (!%p163_p2)  ;;  %v752_v12 = vld [vmem:[%s824_s3 + $0x8] sm:$0xff] (!%p163_p2) }
   0x6   : > { %166 = sbr.rel (%p163_p2) target bundleno = 1060 (0x424), region = 36  ;;  %s658_s22 = smov (!%p163_p2), 16   ;;  %458 = vmatprep.mubr.f32.mxu0 (!%p163_p2), %v663_v2  ;;  %642 = vset.pattern.permute.xlu0 (!%p163_p2), %v665_v3  ;;  %v747_v11 = vld [vmem:[%s824_s3] sm:$0xff] (!%p163_p2)  ;;  %vm370_vm4 = vcmask (!%p163_p2), 1043456   ;;  %vm384_vm9 = vcmask (!%p163_p2), 293888   ;;  %vm473_vm10 = vcmask (!%p163_p2), 7168  }
   0x7   : > { %s659_s23 = smov (!%p163_p2), 17   ;;  %s660_s24 = smov (!%p163_p2), 15   ;;  %v739_v6 = vshrl.u32 (!%p163_p2), %v212_v5, 7  ;;  %v741_v7 = vand.u32 (!%p163_p2), 127, %v212_v5 }
   0x8   : > { %s661_s25 = smov (!%p163_p2), 127   ;;  %s662_s26 = smov (!%p163_p2), 112  }
   0x9   : > { %s664_s27 = smov (!%p163_p2), 113   ;;  %s666_s28 = smov (!%p163_p2), 111   ;;  %v270_v10 = vsub.s32 (!%p163_p2), 3, %v739_v6  ;;  %v236_v13 = vsub.s32 (!%p163_p2), 1, %v739_v6  ;;  %vm265_vm0 = vcmp.lt.s32.totalorder (!%p163_p2), %v741_v7, 1  ;;  %v219_v16 = vsub.s32 (!%p163_p2), 0, %v739_v6 }
   0xa   : > { %vm231_vm1 = vcmp.lt.s32.totalorder (!%p163_p2), %v741_v7, 16  ;;  %v253_v19 = vsub.s32 (!%p163_p2), 2, %v739_v6  ;;  %vm214_vm2 = vcmp.lt.s32.totalorder (!%p163_p2), %v741_v7, 17  ;;  %vm248_vm3 = vcmp.lt.s32.totalorder (!%p163_p2), %v741_v7, 15 }
   0xb   : > { %v271_v17 = vrot.slane (!%p163_p2), %v747_v11, %v270_v10  ;;  %v275_v18 = vrot.slane (!%p163_p2), %v752_v12, %v270_v10  ;;  %v237_v22 = vrot.slane (!%p163_p2), %v747_v11, %v236_v13  ;;  %v241_v23 = vrot.slane (!%p163_p2), %v752_v12, %v236_v13 }
   0xc   : > { %v220_v24 = vrot.slane (!%p163_p2), %v747_v11, %v219_v16  ;;  %v224_v25 = vrot.slane (!%p163_p2), %v752_v12, %v219_v16  ;;  %v254_v34 = vrot.slane (!%p163_p2), %v747_v11, %v253_v19  ;;  %v258_v35 = vrot.slane (!%p163_p2), %v752_v12, %v253_v19 }
   0xd   : > { %s827_s16 = smov (!%p188_p3, %s589_s16), 1  ;;  %v287_v38 = vsub.s32 5, %v739_v6  ;;  %vm282_vm5 = vcmp.lt.s32.totalorder %v741_v7, 127  ;;  %v321_v43 = vsub.s32 7, %v739_v6  ;;  %vm316_vm6 = vcmp.lt.s32.totalorder %v741_v7, 112 }
   0xe   : > { %s605_s17 = sshll.u32 %s827_s16, 3  ;;  %v304_v5 = vsub.s32 6, %v739_v6  ;;  %vm299_vm7 = vcmp.lt.s32.totalorder %v741_v7, 113  ;;  %vm333_vm8 = vcmp.lt.s32.totalorder %v741_v7, 111 }
   0xf   : > { %s192_s20 = scalar_lea.vmem %s821_s0, %s605_s17  ;;  %v288_v52 = vrot.slane %v747_v11, %v287_v38  ;;  %v292_v53 = vrot.slane %v752_v12, %v287_v38  ;;  %v322_v2 = vrot.slane %v747_v11, %v321_v43  ;;  %v326_v3 = vrot.slane %v752_v12, %v321_v43 }
  0x10   : > { %v709_v0 = vld [vmem:[%s192_s20] sm:$0xff]  ;;  %v309_v19 = vrot.slane %v752_v12, %v304_v5 }
  0x11   : > { %261 = vrot.lane.b32.xlu1 %v709_v0, %s657_s21  ;;  %227 = vrot.lane.b32.xlu0 %v709_v0, %s658_s22  ;;  %v716_v1 = vcombine.high %v709_v0, %v709_v0 }
  0x15   : > { %208 = vrot.lane.b32.xlu0 %v709_v0, %s659_s23  ;;  %263 = vrot.lane.b32.xlu1 %v716_v1, %s657_s21 }
  0x19   : > { %210 = vrot.lane.b32.xlu1 %v716_v1, %s659_s23  ;;  %229 = vrot.lane.b32.xlu0 %v716_v1, %s658_s22 }
  0x1d   : > { %246 = vrot.lane.b32.xlu1 %v716_v1, %s660_s24  ;;  %244 = vrot.lane.b32.xlu0 %v709_v0, %s660_s24  ;;  %s668_s24 = smov 0.0  }
  0x21   : > { %280 = vrot.lane.b32.xlu1 %v716_v1, %s661_s25  ;;  %278 = vrot.lane.b32.xlu0 %v709_v0, %s661_s25 }
  0x25   : > { %314 = vrot.lane.b32.xlu1 %v716_v1, %s662_s26  ;;  %312 = vrot.lane.b32.xlu0 %v709_v0, %s662_s26 }
  0x29   : > { %297 = vrot.lane.b32.xlu1 %v716_v1, %s664_s27  ;;  %295 = vrot.lane.b32.xlu0 %v709_v0, %s664_s27 }
  0x2d   : > { %331 = vrot.lane.b32.xlu1 %v716_v1, %s666_s28  ;;  %329 = vrot.lane.b32.xlu0 %v709_v0, %s666_s28  ;;  %s606_s28 = sshll.u32 %s827_s16, 4 }
  0x2e   : > { %s197_s5 = scalar_lea.vmem %s825_s4, %s606_s28 }
  0x31   : > { %381 = vperm.xlu0 %642, %v736_v4  }
  0x83   : > { %v262_v8 = vpop.permute.xlu1 %261  ;;  %v228_v9 = vpop.permute.xlu0 %227 }
  0x87   : > { %v209_v14 = vpop.permute.xlu0 %208  ;;  %v264_v15 = vpop.permute.xlu1 %263 }
  0x88   : > { %v266_v20 = vsel %vm265_vm0, %v262_v8, %v264_v15  ;;  %v267_v21 = vsel %vm265_vm0, %v264_v15, %v262_v8 }
  0x89   : > { %v276_v28 = vmul.f32 %v271_v17, %v267_v21  ;;  %v277_v29 = vmul.f32 %v275_v18, %v266_v20  ;;  %v305_v18 = vrot.slane %v747_v11, %v304_v5 }
  0x8b   : > { %v211_v26 = vpop.permute.xlu1 %210  ;;  %v230_v27 = vpop.permute.xlu0 %229  ;;  %v354_v44 = vrot.slane %v276_v28, 4  ;;  %v355_v45 = vrot.slane %v277_v29, 4  ;;  %v599_v29 = vld [vmem:[%s824_s3 + $0x18] ss:$0 sm:$0xff] }
  0x8c   : > { %v232_v30 = vsel %vm231_vm1, %v228_v9, %v230_v27  ;;  %v233_v31 = vsel %vm231_vm1, %v230_v27, %v228_v9  ;;  %v215_v36 = vsel %vm214_vm2, %v209_v14, %v211_v26  ;;  %v216_v37 = vsel %vm214_vm2, %v211_v26, %v209_v14 }
  0x8d   : > { %v242_v32 = vmul.f32 %v237_v22, %v233_v31  ;;  %v243_v33 = vmul.f32 %v241_v23, %v232_v30  ;;  %v225_v48 = vmul.f32 %v220_v24, %v216_v37  ;;  %v226_v49 = vmul.f32 %v224_v25, %v215_v36 }
  0x8f   : > { %v348_v39 = vrot.slane %v242_v32, 4  ;;  %v349_v40 = vrot.slane %v243_v33, 4  ;;  %v247_v41 = vpop.permute.xlu1 %246  ;;  %v245_v42 = vpop.permute.xlu0 %244 }
  0x90   : > { %v249_v46 = vsel %vm248_vm3, %v245_v42, %v247_v41  ;;  %v250_v47 = vsel %vm248_vm3, %v247_v41, %v245_v42 }
  0x91   : > { %v259_v50 = vmul.f32 %v254_v34, %v250_v47  ;;  %v260_v51 = vmul.f32 %v258_v35, %v249_v46  ;;  %v372_v56 = vsel %vm370_vm4, %v226_v49, %v349_v40  ;;  %v371_v58 = vsel %vm370_vm4, %v225_v48, %v348_v39  ;;  %v598_v34 = vld [vmem:[%s824_s3 + $0x10] ss:$0 sm:$0xff] }
  0x93   : > { %v281_v54 = vpop.permute.xlu1 %280  ;;  %v279_v55 = vpop.permute.xlu0 %278  ;;  %v374_v57 = vsel %vm370_vm4, %v260_v51, %v355_v45  ;;  %v373_v59 = vsel %vm370_vm4, %v259_v50, %v354_v44 }
  0x94   : > { %v283_v60 = vsel %vm282_vm5, %v279_v55, %v281_v54  ;;  %v284_v61 = vsel %vm282_vm5, %v281_v54, %v279_v55  ;;  %v607_v62 = vpack.c.bf16 %v374_v57, %v372_v56  ;;  %v609_v63 = vpack.c.bf16 %v373_v59, %v371_v58 }
  0x95   : > { %v293_v8 = vmul.f32 %v288_v52, %v283_v60  ;;  %v294_v9 = vmul.f32 %v292_v53, %v284_v61 }
  0x96   : > { %608 = vmatprep.subr.bf16.mxu0 %v607_v62 }
  0x97   : > { %v315_v10 = vpop.permute.xlu1 %314  ;;  %610 = vmatpush1.bf16.msra.mxu0 %v609_v63  ;;  %v313_v13 = vpop.permute.xlu0 %312  ;;  %v360_v20 = vrot.slane %v293_v8, 4  ;;  %v361_v21 = vrot.slane %v294_v9, 4  ;;  %v667_v63 = vmov 1  }
  0x98   : > { %v317_v14 = vsel %vm316_vm6, %v313_v13, %v315_v10  ;;  %v318_v15 = vsel %vm316_vm6, %v315_v10, %v313_v13  ;;  %643 = vset.pattern.permute.xlu0 %v667_v63  ;;  %v669_v10 = vmov 2  }
  0x99   : > { %v327_v16 = vmul.f32 %v322_v2, %v317_v14  ;;  %v328_v17 = vmul.f32 %v326_v3, %v318_v15  ;;  %v376_v11 = vsel %vm370_vm4, %v716_v1, %v361_v21  ;;  %v375_v32 = vsel %vm370_vm4, %v709_v0, %v360_v20  ;;  %v198_v0 = vld [vmem:[%s822_s1] sm:$0xff]  ;;  %644 = vset.pattern.permute.xlu1 %v669_v10 }
  0x9b   : > { %v298_v22 = vpop.permute.xlu1 %297  ;;  %v296_v6 = vpop.permute.xlu0 %295  ;;  %v366_v25 = vrot.slane %v327_v16, 4  ;;  %v367_v26 = vrot.slane %v328_v17, 4 }
  0x9c   : > { %v300_v23 = vsel %vm299_vm7, %v296_v6, %v298_v22  ;;  %v301_v24 = vsel %vm299_vm7, %v298_v22, %v296_v6 }
  0x9d   : > { %v310_v27 = vmul.f32 %v305_v18, %v300_v23  ;;  %v311_v28 = vmul.f32 %v309_v19, %v301_v24 }
  0x9f   : > { %v332_v30 = vpop.permute.xlu1 %331  ;;  %v378_v12 = vsel %vm370_vm4, %v311_v28, %v367_v26  ;;  %v330_v31 = vpop.permute.xlu0 %329  ;;  %v377_v7 = vsel %vm370_vm4, %v310_v27, %v366_v25 }
  0xa0   : > { %v611_v33 = vpack.c.bf16 %v378_v12, %v376_v11  ;;  %v334_v35 = vsel %vm333_vm8, %v330_v31, %v332_v30  ;;  %v335_v36 = vsel %vm333_vm8, %v332_v30, %v330_v31  ;;  %v613_v37 = vpack.c.bf16 %v377_v7, %v375_v32 }
  0xa1   : > { %v345_v38 = vmul.f32 %v599_v29, %v335_v36  ;;  %v344_v39 = vmul.f32 %v598_v34, %v334_v35 }
  0xa2   : > { %612 = vmatprep.subr.bf16.mxu0 %v611_v33 }
  0xa3   : > { %614 = vmatpush1.bf16.msra.mxu0 %v613_v37 }
  0xa4   : > { %600 = vmatprep.subr.msk.mxu0 %vm370_vm4, %v345_v38 }
  0xa7   : > { %601 = vmatpush1.msk.msra.mxu0 %vm370_vm4, %v344_v39 }
  0xa8   : > { %602 = vmatmul.mubr.msk.f32.vlgmr.msra.gmra.mrb[0].mxu0 %vm384_vm9, %v198_v0 }
  0xb0   : > { %v382_v1 = vpop.permute.xlu0 %381 }
 0x17b   : > { %v460_v40 = vpop.f32.mrb[0].mxu0 }
 0x17c   : > { %v461_v41 = vadd.f32 %v460_v40, %v382_v1  ;;  %v462_v42 = vpop.f32.mrb[1].mxu0 }
 0x17d   : > { %v463_v43 = vadd.f32 %v462_v42, %v382_v1 }
 0x17e   : > { %v468_v44 = vmul.f32 %v461_v41, %v461_v41 }
 0x17f   : > { %v465_v45 = vadd.f32 %v463_v43, %v461_v41  ;;  %v469_v46 = vmul.f32 %v463_v43, %v463_v43 }
 0x181   : > { %466 = vadd.xlane.f32.xlu1 %v465_v45  ;;  %v470_v47 = vadd.f32 %v469_v46, %v468_v44 }
 0x183   : > { %471 = vadd.xlane.f32.xlu0 %v470_v47 }
 0x20e   : > { %v467_v48 = vpop.xlane.xlu1 %466 }
 0x20f   : > { %v474_v49 = vsel %vm473_vm10, %v467_v48, 0.0 }
 0x210   : > { %v472_v50 = vpop.xlane.xlu0 %471  ;;  %475 = vadd.xlane.f32.xlu1 %v474_v49 }
 0x211   : > { %v485_v51 = vsel %vm473_vm10, %v472_v50, 0.0 }
 0x212   : > { %486 = vadd.xlane.f32.xlu0 %v485_v51 }
 0x29d   : > { %v476_v52 = vpop.xlane.xlu1 %475 }
 0x29e   : > { %v477_v53 = vrot.slane %v476_v52, 4 }
 0x29f   : > { %v487_v54 = vpop.xlane.xlu0 %486 }
 0x2a0   : > { %v478_v55 = vadd.f32 %v477_v53, %v476_v52  ;;  %v488_v56 = vrot.slane %v487_v54, 4 }
 0x2a2   : > { %v479_v57 = vrot.slane %v478_v55, 2  ;;  %v489_v58 = vadd.f32 %v488_v56, %v487_v54 }
 0x2a4   : > { %v490_v59 = vrot.slane %v489_v58, 2  ;;  %v480_v60 = vadd.f32 %v479_v57, %v478_v55 }
 0x2a6   : > { %v481_v61 = vrot.slane %v480_v60, 1  ;;  %v491_v62 = vadd.f32 %v490_v59, %v489_v58 }
 0x2a8   : > { %v482_v2 = vadd.f32 %v481_v61, %v480_v60  ;;  %v492_v3 = vrot.slane %v491_v62, 1 }
 0x2aa   : > { %615 = vpush %v482_v2  ;;  %v493_v5 = vadd.f32 %v492_v3, %v491_v62 }
 0x2ac   : > { %617 = vpush %v493_v5 }
 0x2db   : > { %s616_s17 = spop %615 }
 0x2dc   : > { %s484_s18 = smul.f32 0.00048828125, %s616_s17 }
 0x2dd   : > { %s618_s19 = spop %617 }
 0x2de   : > { %s496_s20 = smul.f32 %s484_s18, %s484_s18  ;;  %v505_v15 = vstv %s484_s18 }
 0x2df   : > { %s495_s22 = smul.f32 0.00048828125, %s618_s19 }
 0x2e1   : > { %s497_s23 = ssub.f32 %s495_s22, %s496_s20 }
 0x2e3   : > { %s498_s25 = smax.f32 %s668_s24, %s497_s23 }
 0x2e4   : > { %s499_s26 = sadd.f32 1e-05, %s498_s25 }
 0x2e6   : > { %v500_v8 = vstv %s499_s26 }
 0x2e7   : > { %647 = vrsqrt.f32 %v500_v8 }
 0x2f1   : > { %v648_v9 = vpop.eup %647 }
 0x2f2   : > { %619 = vpush %v648_v9 }
 0x323   : > { %s620_s27 = spop %619 }
 0x324   : > { %v503_v13 = vstv %s620_s27 }
 0x325   : > { %v504_v14 = vmul.f32 %v503_v13, %v736_v4 }
 0x327   : > { %v506_v16 = vmul.f32 %v505_v15, %v504_v14  ;;  %514 = vperm.xlu0 %643, %v504_v14  }
 0x329   : > { %508 = vrot.lane.b32.xlu1 %v506_v16, %s657_s21 }
 0x32b   : > { %645 = vset.pattern.permute.xlu0 %v669_v10 }
 0x39b   : > { %v509_v17 = vpop.permute.xlu1 %508 }
 0x39c   : > { %v511_v18 = vsub.f32 %v736_v4, %v509_v17 }
 0x39e   : > { %521 = vperm.xlu1 %644, %v511_v18  }
 0x3a6   : > { %v515_v19 = vpop.permute.xlu0 %514 }
 0x3a7   : > { %v517_v20 = vmul.f32 %v515_v19, %v461_v41  ;;  %v518_v21 = vmul.f32 %v515_v19, %v463_v43 }
 0x41d   : > { %v522_v22 = vpop.permute.xlu1 %521 }
 0x41e   : > { %v524_v6 = vadd.f32 %v522_v22, %v517_v20  ;;  %v525_v23 = vadd.f32 %v522_v22, %v518_v21 }
 0x420   : > { %vm526_vm11 = vcmp.ge.f32.partialorder %v524_v6, 0.0  ;;  %vm527_vm12 = vcmp.ge.f32.partialorder %v525_v23, 0.0  ;;  %v528_v24 = vmul.f32 0.2, %v524_v6  ;;  %v529_v25 = vmul.f32 0.2, %v525_v23 }
 0x422   : > { %v530_v26 = vsel %vm526_vm11, %v524_v6, %v528_v24  ;;  %v531_v27 = vsel %vm527_vm12, %v525_v23, %v529_v25 }
 0x423   : > { %532 = vst [vmem:[%s197_s5] sm:$0xff] %v530_v26  ;;  %533 = vst [vmem:[%s197_s5 + $0x8] sm:$0xff] %v531_v27 }
 0x424 PF: > { %s14_s15 = sadd.s32 1, %s655_s15  }
 0x425   : > { %p11_p4 = scmp.ge.s32.totalorder %s14_s15, 4  }
 0x427   :  { %13 = sbr.rel (!%p11_p4) target bundleno = 1 (0x1), region = 66 }

</bundles_post_ra>
